<compile_context>
chip_gen: v7x
topology: tpu7x:2x2x1
jax: 0.10.0
libtpu: 0.0.40
codegen_flags: <defaults>
</compile_context>

<pallas_src>
import math
import functools

import numpy as np
import jax
import jax.numpy as jnp
from jax import lax
from jax.experimental import pallas as pl
from jax.experimental.pallas import tpu as pltpu


def _round_up(x, m):
    return ((x + m - 1) // m) * m


def _num_entity_blocks(num_entity):
    """Use 2 entity blocks only on chips with 2 TensorCores (v7x); v5e/v6e
    have one TC so a >1 grid is just sequential loop overhead."""
    try:
        kind = jax.devices()[0].device_kind.lower()
        two_cores = "7" in kind            # e.g. "tpu7x"
    except Exception:
        two_cores = False
    if two_cores and num_entity % 2 == 0 and (num_entity // 2) % 8 == 0:
        return 2
    return 1


# ---------------------------------------------------------------------------
# Switch-MoE helper (runs inside the kernels). Experts are pre-flattened
# host-side to one lane-dense (DV, NE*H) weight so it is a single matmul.
# ---------------------------------------------------------------------------
def _moe(x, wg, bg, we, be, *, num_experts, top_k, hidden):
    logits = jnp.dot(x, wg, preferred_element_type=jnp.float32) + bg
    logits = logits - jnp.max(logits, axis=-1, keepdims=True)
    probs = jnp.exp(logits)
    probs = probs / jnp.sum(probs, axis=-1, keepdims=True)              # (rows, NE)
    # top-k via iterative max masking (exact float ties could keep >k)
    kept = jnp.zeros_like(probs)
    remaining = probs
    for _ in range(top_k):                                              # static unroll
        m = jnp.max(remaining, axis=-1, keepdims=True)
        sel = remaining == m
        kept = jnp.where(sel, probs, kept)
        remaining = jnp.where(sel, -jnp.inf, remaining)
    gate = kept / jnp.sum(kept, axis=-1, keepdims=True)                 # (rows, NE)
    # all experts in ONE matmul, then gated combine via lane slices
    y = jnp.dot(x, we, preferred_element_type=jnp.float32) + be         # (rows, NE*H)
    out = gate[:, 0:1] * y[:, 0:hidden]
    for e in range(1, num_experts):                                     # static unroll
        out = out + gate[:, e:e + 1] * y[:, e * hidden:(e + 1) * hidden]
    return out                                                          # (rows, H)


# ---------------------------------------------------------------------------
# One-shot mention path: MoE on (padded) mention tokens + fused k|v projection.
# Computed once per forward; outputs are grid-invariant inputs of the main kernel.
# ---------------------------------------------------------------------------
def mention_kv_kernel(mtok_ref, wg_ref, bg_ref, we_ref, be_ref, wkv_ref, bkv_ref,
                      k_ref, v_ref, *, num_experts, top_k, hidden):
    moe_out = _moe(mtok_ref[...], wg_ref[...], bg_ref[...], we_ref[...], be_ref[...],
                   num_experts=num_experts, top_k=top_k, hidden=hidden)
    kv = (jnp.dot(moe_out, wkv_ref[...], preferred_element_type=jnp.float32)
          + bkv_ref[...])                                               # (B*Pp, 2H)
    k_ref[...] = kv[:, :hidden]
    v_ref[...] = kv[:, hidden:2 * hidden]


# ---------------------------------------------------------------------------
# Main fused kernel, gridded over blocks of `te` entities.
# Computes the (te, B) block of the [E, B] matching-score matrix.
# ---------------------------------------------------------------------------
def vision_unit_kernel(ent_ref, mcls_ref, k_ref, v_ref,
                       wg_ref, bg_ref, we_ref, be_ref,
                       wq_ref, bq_ref, gamma_ref, beta_ref,
                       sel_ref, avg_ref, out_ref,
                       *, num_experts, top_k, num_patch, pad_patch, hidden):
    P, Pp, H = num_patch, pad_patch, hidden
    B = mcls_ref.shape[0]
    te = sel_ref.shape[0]
    M = ent_ref.shape[0]                      # te * rows_per_entity (8-aligned)
    inv_sqrt = 1.0 / math.sqrt(H)

    # Entity-side MoE: ONE call over the whole [cls | tokens | pad] block.
    x = ent_ref[...]                          # (M, DV)
    moe_out = _moe(x, wg_ref[...], bg_ref[...], we_ref[...], be_ref[...],
                   num_experts=num_experts, top_k=top_k, hidden=H)      # (M, H)

    sel = sel_ref[...]                        # (te, M): picks cls row of each entity
    avg = avg_ref[...]                        # (te, M): 1/P over each entity's token rows
    ecls_moe = jnp.dot(sel, moe_out, preferred_element_type=jnp.float32)  # (te, H)
    ecls_raw = jnp.dot(sel, x, preferred_element_type=jnp.float32)        # (te, DV)
    # Query projection on all rows (cls/pad rows excluded later via `avg`).
    q = (jnp.dot(moe_out, wq_ref[...], preferred_element_type=jnp.float32)
         + bq_ref[...])                                                   # (M, H)

    gamma = gamma_ref[...]
    beta = beta_ref[...]

    # g2g contribution (x 1/2), accumulated into a (te, B) register tile.
    acc = 0.5 * lax.dot_general(ecls_raw, mcls_ref[...], (((1,), (1,)), ((), ())),
                                preferred_element_type=jnp.float32)       # (te, B)

    out_col = lax.broadcasted_iota(jnp.int32, (te, B), 1)
    if Pp > P:
        key_valid = lax.broadcasted_iota(jnp.int32, (M, Pp), 1) < P

    for b in range(B):                        # static unroll over batch
        k_b = k_ref[pl.ds(b * Pp, Pp), :]     # (Pp, H) — sublane-aligned slice
        v_b = v_ref[pl.ds(b * Pp, Pp), :]
        s = lax.dot_general(q, k_b, (((1,), (1,)), ((), ())),
                            preferred_element_type=jnp.float32) * inv_sqrt  # (M, Pp)
        if Pp > P:
            s = jnp.where(key_valid, s, -1e30)       # mask padded key columns
        s = s - jnp.max(s, axis=-1, keepdims=True)
        p = jnp.exp(s)
        p = p / jnp.sum(p, axis=-1, keepdims=True)
        ctx = jnp.dot(p, v_b, preferred_element_type=jnp.float32)           # (M, H)
        ctx = jnp.dot(avg, ctx, preferred_element_type=jnp.float32)         # (te, H)
        # LayerNorm over H (eps = 1e-5, affine)
        mu = jnp.mean(ctx, axis=-1, keepdims=True)
        var = jnp.mean((ctx - mu) ** 2, axis=-1, keepdims=True)
        ctx = (ctx - mu) / jnp.sqrt(var + 1e-5) * gamma + beta
        g2l_b = 0.5 * jnp.sum(ecls_moe * ctx, axis=-1, keepdims=True)       # (te, 1)
        acc = acc + jnp.where(out_col == b, g2l_b, 0.0)

    out_ref[...] = acc.astype(out_ref.dtype)


# ---------------------------------------------------------------------------
# VisionUnit.forward wrapper: host-side layout plumbing + two pallas_calls.
# ---------------------------------------------------------------------------
def vision_unit_forward(params, entity_cls, entity_tok, mention_cls, mention_tok,
                        *, num_experts, top_k):
    E, P, DV = entity_tok.shape
    B = mention_cls.shape[0]
    H = params["wq"].shape[1]
    NE = num_experts
    assert DV == H, "module implicitly requires dv == IDLU_hidden_dim"

    Rp = _round_up(1 + P, 8)      # rows per entity: cls + P tokens (+ zero pad)
    Pp = _round_up(P, 8)          # padded patches per mention

    # Entity: [cls | tokens | pad] per entity, flattened (E*Rp, DV).
    ent_cat = jnp.concatenate([entity_cls[:, None, :], entity_tok], axis=1)
    if Rp > 1 + P:
        ent_cat = jnp.pad(ent_cat, ((0, 0), (0, Rp - 1 - P), (0, 0)))
    ent_flat = ent_cat.reshape(E * Rp, DV)

    # Mention tokens zero-padded to Pp rows per mention, flattened (B*Pp, DV).
    mtok_pad = mention_tok
    if Pp > P:
        mtok_pad = jnp.pad(mention_tok, ((0, 0), (0, Pp - P), (0, 0)))
    mtok_flat = mtok_pad.reshape(B * Pp, DV)

    # Expert weights flattened to a single lane-dense (DV, NE*H) weight.
    we_flat = params["we"].transpose(1, 0, 2).reshape(DV, NE * H)
    be_flat = params["be"].reshape(1, NE * H)

    # Fused k|v projection (one matmul in the mention kernel).
    wkv = jnp.concatenate([params["wk"], params["wv"]], axis=1)   # (H, 2H)
    bkv = jnp.concatenate([params["bk"], params["bv"]], axis=1)   # (1, 2H)

    # ---- mention path, computed ONCE (hoisted out of the gridded kernel) ----
    k, v = pl.pallas_call(
        functools.partial(mention_kv_kernel, num_experts=NE, top_k=top_k, hidden=H),
        out_shape=(jax.ShapeDtypeStruct((B * Pp, H), jnp.float32),
                   jax.ShapeDtypeStruct((B * Pp, H), jnp.float32)),
    )(mtok_flat, params["wg"], params["bg"], we_flat, be_flat, wkv, bkv)

    # ---- entity-gridded main kernel ----
    nb = _num_entity_blocks(E)
    te = E // nb

    # Host-side constant selection / averaging matrices (same for every block).
    r = np.arange(te)[:, None]
    c = np.arange(te * Rp)[None, :]
    sel = jnp.asarray((c == r * Rp).astype(np.float32))                       # cls rows
    avg = jnp.asarray(((c >= r * Rp + 1) & (c <= r * Rp + P)).astype(np.float32) / P)

    kern = functools.partial(vision_unit_kernel, num_experts=NE, top_k=top_k,
                             num_patch=P, pad_patch=Pp, hidden=H)

    score_eb = pl.pallas_call(
        kern,
        out_shape=jax.ShapeDtypeStruct((E, B), jnp.float32),
        grid_spec=pltpu.PrefetchScalarGridSpec(
            num_scalar_prefetch=0,
            grid=(nb,),
            in_specs=[
                pl.BlockSpec((te * Rp, DV), lambda i: (i, 0)),   # entity cat (flat)
                pl.BlockSpec((B, DV), lambda i: (0, 0)),         # mention_cls
                pl.BlockSpec((B * Pp, H), lambda i: (0, 0)),     # k (grid-invariant)
                pl.BlockSpec((B * Pp, H), lambda i: (0, 0)),     # v (grid-invariant)
                pl.BlockSpec((DV, NE), lambda i: (0, 0)),        # wg
                pl.BlockSpec((1, NE), lambda i: (0, 0)),         # bg
                pl.BlockSpec((DV, NE * H), lambda i: (0, 0)),    # we (flattened)
                pl.BlockSpec((1, NE * H), lambda i: (0, 0)),     # be (flattened)
                pl.BlockSpec((H, H), lambda i: (0, 0)),          # wq
                pl.BlockSpec((1, H), lambda i: (0, 0)),          # bq
                pl.BlockSpec((1, H), lambda i: (0, 0)),          # gamma
                pl.BlockSpec((1, H), lambda i: (0, 0)),          # beta
                pl.BlockSpec((te, te * Rp), lambda i: (0, 0)),   # sel
                pl.BlockSpec((te, te * Rp), lambda i: (0, 0)),   # avg
            ],
            out_specs=pl.BlockSpec((te, B), lambda i: (i, 0)),
        ),
        compiler_params=pltpu.CompilerParams(
            dimension_semantics=("parallel",) if nb > 1 else ("arbitrary",),
            vmem_limit_bytes=32 * 1024 * 1024,
        ),
    )(ent_flat, mention_cls, k, v,
      params["wg"], params["bg"], we_flat, be_flat,
      params["wq"], params["bq"], params["gamma"], params["beta"], sel, avg)

    return score_eb.T                                            # (batch_size, num_entity)


# ---------------------------------------------------------------------------
# Pure-JAX reference (mirrors the PyTorch forward).
# ---------------------------------------------------------------------------
def _moe_ref(x, params, top_k):
    logits = jnp.einsum('...d,de->...e', x, params["wg"]) + params["bg"][0]
    probs = jax.nn.softmax(logits, axis=-1)
    _, idx = lax.top_k(probs, top_k)
    mask = jnp.sum(jax.nn.one_hot(idx, probs.shape[-1], dtype=probs.dtype), axis=-2)
    kept = probs * mask
    w = kept / jnp.sum(kept, axis=-1, keepdims=True)
    ex = jnp.einsum('...d,edh->...eh', x, params["we"]) + params["be"]
    return jnp.einsum('...e,...eh->...h', w, ex)


def reference_forward(params, ecls, etok, mcls, mtok, *, top_k):
    H = params["wq"].shape[1]
    ecat = jnp.concatenate([ecls[:, None, :], etok], axis=1)
    mcat = jnp.concatenate([mcls[:, None, :], mtok], axis=1)
    emoe = _moe_ref(ecat, params, top_k)
    mmoe = _moe_ref(mcat, params, top_k)
    ecls_moe, etok_m = emoe[:, 0, :], emoe[:, 1:, :]
    mtok_m = mmoe[:, 1:, :]
    q = etok_m @ params["wq"] + params["bq"]
    k = mtok_m @ params["wk"] + params["bk"]
    v = mtok_m @ params["wv"] + params["bv"]
    scores = jnp.einsum('epd,bqd->ebpq', q, k) / math.sqrt(H)
    probs = jax.nn.softmax(scores, axis=-1)
    ctx = jnp.einsum('ebpq,bqd->ebpd', probs, v)
    ctx = jnp.mean(ctx, axis=2)                                  # (E, B, H)
    mu = jnp.mean(ctx, axis=-1, keepdims=True)
    var = jnp.mean((ctx - mu) ** 2, axis=-1, keepdims=True)
    ctx = (ctx - mu) / jnp.sqrt(var + 1e-5) * params["gamma"][0] + params["beta"][0]
    g2l = jnp.sum(ecls_moe[:, None, :] * ctx, axis=-1).T          # (B, E)
    g2g = mcls @ ecls.T                                           # (B, E)
    return (g2l + g2g) / 2


if __name__ == "__main__":
    jax.config.update("jax_default_matmul_precision", "highest")

    E, B, P, DV, H = 16, 4, 7, 32, 32          # num_entity, batch, num_patch, dv, IDLU_hidden_dim
    NE, TOPK = 4, 2                            # num_experts, top_experts

    key = jax.random.PRNGKey(0)
    ks = jax.random.split(key, 16)
    entity_cls = jax.random.normal(ks[0], (E, DV), jnp.float32)
    entity_tok = jax.random.normal(ks[1], (E, P, DV), jnp.float32)
    mention_cls = jax.random.normal(ks[2], (B, DV), jnp.float32)
    mention_tok = jax.random.normal(ks[3], (B, P, DV), jnp.float32)

    params = dict(
        wg=0.1 * jax.random.normal(ks[4], (DV, NE), jnp.float32),
        bg=0.1 * jax.random.normal(ks[5], (1, NE), jnp.float32),
        we=0.1 * jax.random.normal(ks[6], (NE, DV, H), jnp.float32),
        be=0.1 * jax.random.normal(ks[7], (NE, H), jnp.float32),
        wq=0.1 * jax.random.normal(ks[8], (H, H), jnp.float32),
        bq=0.1 * jax.random.normal(ks[9], (1, H), jnp.float32),
        wk=0.1 * jax.random.normal(ks[10], (H, H), jnp.float32),
        bk=0.1 * jax.random.normal(ks[11], (1, H), jnp.float32),
        wv=0.1 * jax.random.normal(ks[12], (H, H), jnp.float32),
        bv=0.1 * jax.random.normal(ks[13], (1, H), jnp.float32),
        gamma=1.0 + 0.1 * jax.random.normal(ks[14], (1, H), jnp.float32),
        beta=0.1 * jax.random.normal(ks[15], (1, H), jnp.float32),
    )

    out = vision_unit_forward(params, entity_cls, entity_tok, mention_cls, mention_tok,
                              num_experts=NE, top_k=TOPK)
    out = jax.block_until_ready(out)
    assert out.shape == (B, E), out.shape

    ref = reference_forward(params, entity_cls, entity_tok, mention_cls, mention_tok, top_k=TOPK)
    assert jnp.allclose(out, ref, atol=2e-3, rtol=2e-3), float(jnp.max(jnp.abs(out - ref)))

    print("KERNEL_OK")
</pallas_src>

<mosaic_0001>
module attributes {stable_mosaic.version = 11 : i64} {
  func.func @mention_kv_kernel(%arg0: memref<32x32xf32, #tpu.memory_space<vmem>>, %arg1: memref<32x4xf32, #tpu.memory_space<vmem>>, %arg2: memref<1x4xf32, #tpu.memory_space<vmem>>, %arg3: memref<32x128xf32, #tpu.memory_space<vmem>>, %arg4: memref<1x128xf32, #tpu.memory_space<vmem>>, %arg5: memref<32x64xf32, #tpu.memory_space<vmem>>, %arg6: memref<1x64xf32, #tpu.memory_space<vmem>>, %arg7: memref<32x32xf32, #tpu.memory_space<vmem>>, %arg8: memref<32x32xf32, #tpu.memory_space<vmem>>) attributes {dimension_semantics = [], scalar_prefetch = 0 : i64, scratch_operands = 0 : i64, tpu.core_type = #tpu.core_type<tc>} {
    %c0 = arith.constant 0 : index
    %c0_0 = arith.constant 0 : index
    %0 = vector.load %arg0[%c0, %c0_0] : memref<32x32xf32, #tpu.memory_space<vmem>>, vector<32x32xf32>
    %c0_1 = arith.constant 0 : index
    %c0_2 = arith.constant 0 : index
    %1 = vector.load %arg1[%c0_1, %c0_2] : memref<32x4xf32, #tpu.memory_space<vmem>>, vector<32x4xf32>
    %c0_3 = arith.constant 0 : index
    %c0_4 = arith.constant 0 : index
    %2 = vector.load %arg2[%c0_3, %c0_4] : memref<1x4xf32, #tpu.memory_space<vmem>>, vector<1x4xf32>
    %c0_5 = arith.constant 0 : index
    %c0_6 = arith.constant 0 : index
    %3 = vector.load %arg3[%c0_5, %c0_6] : memref<32x128xf32, #tpu.memory_space<vmem>>, vector<32x128xf32>
    %c0_7 = arith.constant 0 : index
    %c0_8 = arith.constant 0 : index
    %4 = vector.load %arg4[%c0_7, %c0_8] : memref<1x128xf32, #tpu.memory_space<vmem>>, vector<1x128xf32>
    %cst = arith.constant dense<0.000000e+00> : vector<32x4xf32>
    %5 = tpu.matmul %0, %1, %cst {dimension_numbers = #tpu.dot_dimension_numbers<[1], [0], [0], [1], [0, 0, 1, 1], [], []>, precision = #tpu.contract_precision<fp32>} : vector<32x32xf32>, vector<32x4xf32>, vector<32x4xf32> -> vector<32x4xf32>
    %6 = vector.broadcast %2 : vector<1x4xf32> to vector<32x4xf32>
    %7 = arith.addf %5, %6 : vector<32x4xf32>
    %cst_9 = arith.constant dense<0xFF800000> : vector<32xf32>
    %8 = vector.multi_reduction <maximumf>, %7, %cst_9 [1] : vector<32x4xf32> to vector<32xf32>
    %9 = vector.shape_cast %8 : vector<32xf32> to vector<32x1xf32>
    %10 = vector.broadcast %9 : vector<32x1xf32> to vector<32x4xf32>
    %11 = arith.subf %7, %10 : vector<32x4xf32>
    %12 = math.exp %11 : vector<32x4xf32>
    %cst_10 = arith.constant dense<0.000000e+00> : vector<32xf32>
    %13 = vector.multi_reduction <add>, %12, %cst_10 [1] : vector<32x4xf32> to vector<32xf32>
    %14 = vector.shape_cast %13 : vector<32xf32> to vector<32x1xf32>
    %15 = vector.broadcast %14 : vector<32x1xf32> to vector<32x4xf32>
    %16 = arith.divf %12, %15 : vector<32x4xf32>
    %cst_11 = arith.constant 0.000000e+00 : f32
    %17 = vector.broadcast %cst_11 : f32 to vector<32x4xf32>
    %cst_12 = arith.constant dense<0xFF800000> : vector<32xf32>
    %18 = vector.multi_reduction <maximumf>, %16, %cst_12 [1] : vector<32x4xf32> to vector<32xf32>
    %19 = vector.shape_cast %18 : vector<32xf32> to vector<32x1xf32>
    %20 = vector.broadcast %19 : vector<32x1xf32> to vector<32x4xf32>
    %21 = arith.cmpf oeq, %16, %20 : vector<32x4xf32>
    %22 = arith.select %21, %16, %17 : vector<32x4xi1>, vector<32x4xf32>
    %cst_13 = arith.constant 0xFF800000 : f32
    %23 = vector.broadcast %cst_13 : f32 to vector<32x4xf32>
    %24 = arith.select %21, %23, %16 : vector<32x4xi1>, vector<32x4xf32>
    %cst_14 = arith.constant dense<0xFF800000> : vector<32xf32>
    %25 = vector.multi_reduction <maximumf>, %24, %cst_14 [1] : vector<32x4xf32> to vector<32xf32>
    %26 = vector.shape_cast %25 : vector<32xf32> to vector<32x1xf32>
    %27 = vector.broadcast %26 : vector<32x1xf32> to vector<32x4xf32>
    %28 = arith.cmpf oeq, %24, %27 : vector<32x4xf32>
    %29 = arith.select %28, %16, %22 : vector<32x4xi1>, vector<32x4xf32>
    %cst_15 = arith.constant dense<0.000000e+00> : vector<32xf32>
    %30 = vector.multi_reduction <add>, %29, %cst_15 [1] : vector<32x4xf32> to vector<32xf32>
    %31 = vector.shape_cast %30 : vector<32xf32> to vector<32x1xf32>
    %32 = vector.broadcast %31 : vector<32x1xf32> to vector<32x4xf32>
    %33 = arith.divf %29, %32 : vector<32x4xf32>
    %cst_16 = arith.constant dense<0.000000e+00> : vector<32x128xf32>
    %34 = tpu.matmul %0, %3, %cst_16 {dimension_numbers = #tpu.dot_dimension_numbers<[1], [0], [0], [1], [0, 0, 1, 1], [], []>, precision = #tpu.contract_precision<fp32>} : vector<32x32xf32>, vector<32x128xf32>, vector<32x128xf32> -> vector<32x128xf32>
    %35 = vector.broadcast %4 : vector<1x128xf32> to vector<32x128xf32>
    %36 = arith.addf %34, %35 : vector<32x128xf32>
    %37 = vector.extract_strided_slice %33 {offsets = [0, 0], sizes = [32, 1], strides = [1, 1]} : vector<32x4xf32> to vector<32x1xf32>
    %38 = vector.extract_strided_slice %36 {offsets = [0, 0], sizes = [32, 32], strides = [1, 1]} : vector<32x128xf32> to vector<32x32xf32>
    %39 = vector.broadcast %37 : vector<32x1xf32> to vector<32x32xf32>
    %40 = arith.mulf %39, %38 : vector<32x32xf32>
    %41 = vector.extract_strided_slice %33 {offsets = [0, 1], sizes = [32, 1], strides = [1, 1]} : vector<32x4xf32> to vector<32x1xf32>
    %42 = vector.extract_strided_slice %36 {offsets = [0, 32], sizes = [32, 32], strides = [1, 1]} : vector<32x128xf32> to vector<32x32xf32>
    %43 = vector.broadcast %41 : vector<32x1xf32> to vector<32x32xf32>
    %44 = arith.mulf %43, %42 : vector<32x32xf32>
    %45 = arith.addf %40, %44 : vector<32x32xf32>
    %46 = vector.extract_strided_slice %33 {offsets = [0, 2], sizes = [32, 1], strides = [1, 1]} : vector<32x4xf32> to vector<32x1xf32>
    %47 = vector.extract_strided_slice %36 {offsets = [0, 64], sizes = [32, 32], strides = [1, 1]} : vector<32x128xf32> to vector<32x32xf32>
    %48 = vector.broadcast %46 : vector<32x1xf32> to vector<32x32xf32>
    %49 = arith.mulf %48, %47 : vector<32x32xf32>
    %50 = arith.addf %45, %49 : vector<32x32xf32>
    %51 = vector.extract_strided_slice %33 {offsets = [0, 3], sizes = [32, 1], strides = [1, 1]} : vector<32x4xf32> to vector<32x1xf32>
    %52 = vector.extract_strided_slice %36 {offsets = [0, 96], sizes = [32, 32], strides = [1, 1]} : vector<32x128xf32> to vector<32x32xf32>
    %53 = vector.broadcast %51 : vector<32x1xf32> to vector<32x32xf32>
    %54 = arith.mulf %53, %52 : vector<32x32xf32>
    %55 = arith.addf %50, %54 : vector<32x32xf32>
    %c0_17 = arith.constant 0 : index
    %c0_18 = arith.constant 0 : index
    %56 = vector.load %arg5[%c0_17, %c0_18] : memref<32x64xf32, #tpu.memory_space<vmem>>, vector<32x64xf32>
    %cst_19 = arith.constant dense<0.000000e+00> : vector<32x64xf32>
    %57 = tpu.matmul %55, %56, %cst_19 {dimension_numbers = #tpu.dot_dimension_numbers<[1], [0], [0], [1], [0, 0, 1, 1], [], []>, precision = #tpu.contract_precision<fp32>} : vector<32x32xf32>, vector<32x64xf32>, vector<32x64xf32> -> vector<32x64xf32>
    %c0_20 = arith.constant 0 : index
    %c0_21 = arith.constant 0 : index
    %58 = vector.load %arg6[%c0_20, %c0_21] : memref<1x64xf32, #tpu.memory_space<vmem>>, vector<1x64xf32>
    %59 = vector.broadcast %58 : vector<1x64xf32> to vector<32x64xf32>
    %60 = arith.addf %57, %59 : vector<32x64xf32>
    %61 = vector.extract_strided_slice %60 {offsets = [0, 0], sizes = [32, 32], strides = [1, 1]} : vector<32x64xf32> to vector<32x32xf32>
    %c0_22 = arith.constant 0 : index
    %c0_23 = arith.constant 0 : index
    %62 = vector.load %arg7[%c0_22, %c0_23] : memref<32x32xf32, #tpu.memory_space<vmem>>, vector<32x32xf32>
    tpu.vector_store %arg7[%c0_22, %c0_23], %61 {strides = array<i32>} : memref<32x32xf32, #tpu.memory_space<vmem>>, vector<32x32xf32>,
    %63 = vector.extract_strided_slice %60 {offsets = [0, 32], sizes = [32, 32], strides = [1, 1]} : vector<32x64xf32> to vector<32x32xf32>
    %c0_24 = arith.constant 0 : index
    %c0_25 = arith.constant 0 : index
    %64 = vector.load %arg8[%c0_24, %c0_25] : memref<32x32xf32, #tpu.memory_space<vmem>>, vector<32x32xf32>
    tpu.vector_store %arg8[%c0_24, %c0_25], %63 {strides = array<i32>} : memref<32x32xf32, #tpu.memory_space<vmem>>, vector<32x32xf32>,
    return
  }
}

</mosaic_0001>

<bundles_post_ra>
// kernel: tpu_custom_call.1
= control target key start
LH: loop header
LB: loop body
LE: loop exit
PB: predicated region body
PF: predicated region fallthrough
CT: control target
= control target key end

     0   :  { %14 = vsyncpa [#allocation3], 0  ;;  %s3507_s0 = inlined_call_operand.vmem [shape: f32[32,32], index: 0, kind: input, shape index: {}]   ;;  %s3508_s1 = inlined_call_operand.vmem [shape: f32[32,4], index: 1, kind: input, shape index: {}]   ;;  %s3509_s2 = inlined_call_operand.vmem [shape: f32[1,4], index: 2, kind: input, shape index: {}]   ;;  %s3510_s3 = inlined_call_operand.hbm [shape: f32[32,128], index: 3, kind: input, shape index: {}]   ;;  %s3511_s4 = inlined_call_operand.vmem [shape: f32[1,128], index: 4, kind: input, shape index: {}]   ;;  %s3512_s5 = inlined_call_operand.hbm [shape: f32[32,64], index: 5, kind: input, shape index: {}]   ;;  %s3513_s6 = inlined_call_operand.vmem [shape: f32[1,64], index: 6, kind: input, shape index: {}]   ;;  %s3514_s7 = inlined_call_operand.hbm [shape: f32[32,32], index: 7, kind: output, shape index: {0}]   ;;  %s3515_s8 = inlined_call_operand.hbm [shape: f32[32,32], index: 8, kind: output, shape index: {1}]  }
   0x1   :  { %15 = vsyncpa [#allocation6], 0 }
   0x2   :  { %16 = vsyncpa [#allocation4], 0 }
   0x3   :  { %17 = vsyncpa [#allocation9], 0  ;;  %s3034_s27 = smov [#allocation2]   ;;  %s2938_s9 = scalar_lea.hbm %s3510_s3, 512 }
   0x4   :  { %s29_s28 = sshll.u32 %s3034_s27, 4  ;;  %p2939_p0 = scmp.ne.s32.totalorder %s3510_s3, %s2938_s9  ;;  %s30_s28 = int_to_ptr.vmem [resolvable:$true] %s29_s28 }
   0x5   :  { %p2942_p1 = scmp.lt.u32.totalorder %s2938_s9, %s3510_s3 }
   0x7   :  { %p2944_p2 = pnand %p2942_p1, %p2939_p0 }
   0x9   :  { %2947 = shalt.err (!%p2944_p2)
}
   0xa   :  { %s2948_s14 = scalar_lea.vmem %s30_s28, 512  ;;  %p2953_p4 = scmp.lt.s32.totalorder %s30_s28, %s30_s28 }
   0xb   :  { %p2949_p3 = scmp.ne.s32.totalorder %s30_s28, %s2948_s14  ;;  %p2954_p5 = scmp.lt.s32.totalorder %s2948_s14, %s2948_s14 }
   0xd   :  { %p2955_p6 = por %p2954_p5, %p2953_p4 }
   0xf   :  { %p2956_p7 = pnand %p2955_p6, %p2949_p3 }
  0x11   :  { %2959 = shalt.err (!%p2956_p7)
}
  0x12   :  { %s3035_s15 = smov 128   ;;  %s3036_s16 = smov 8  }
  0x13   :  { %35 = dma.hbm_to_vmem [thread:$0]  %s3510_s3, 512, %s30_s28, [#allocation3], %s3035_s15, %s3035_s15, %s3036_s16  }
  0x14   :  { %s3037_s19 = smov [#allocation5]   ;;  %s2960_s23 = scalar_lea.hbm %s3512_s5, 512 }
  0x15   :  { %s43_s20 = sshll.u32 %s3037_s19, 4  ;;  %p2961_p8 = scmp.ne.s32.totalorder %s3512_s5, %s2960_s23  ;;  %s44_s20 = int_to_ptr.vmem [resolvable:$true] %s43_s20 }
  0x16   :  { %p2964_p9 = scmp.lt.u32.totalorder %s2960_s23, %s3512_s5 }
  0x18   :  { %p2966_p10 = pnand %p2964_p9, %p2961_p8 }
  0x1a   :  { %2969 = shalt.err (!%p2966_p10)
}
  0x1b   :  { %s2970_s29 = scalar_lea.vmem %s44_s20, 512  ;;  %p2975_p12 = scmp.lt.s32.totalorder %s44_s20, %s44_s20 }
  0x1c   :  { %p2971_p11 = scmp.ne.s32.totalorder %s44_s20, %s2970_s29  ;;  %p2976_p13 = scmp.lt.s32.totalorder %s2970_s29, %s2970_s29 }
  0x1e   :  { %p2977_p0 = por %p2976_p13, %p2975_p12 }
  0x20   :  { %p2978_p1 = pnand %p2977_p0, %p2971_p11 }
  0x22   :  { %2981 = shalt.err (!%p2978_p1)
}
  0x23   :  { %49 = dma.hbm_to_vmem [thread:$0]  %s3512_s5, 512, %s44_s20, [#allocation6], %s3035_s15, %s3035_s15, %s3036_s16  }
  0x24   :  { %3026 = dma.done.wait [#allocation3], 512  }
  0x25   :  { %3027 = vsyncadd [#allocation3], 4294966784 }
  0x26   :  { %3028 = dma.done.wait [#allocation6], 512  }
  0x27   :  { %3029 = vsyncadd [#allocation6], 4294966784  ;;  %vm78_vm0 = vcmask 261120   ;;  %v62_v0 = vld [vmem:[%s3508_s1] sm:$0xff]  ;;  %v63_v1 = vld [vmem:[%s3508_s1 + $0x8] sm:$0xff]  ;;  %vm705_vm1 = vcmask 31744  }
  0x28   :  { %v64_v2 = vld [vmem:[%s3508_s1 + $0x10] sm:$0xff]  ;;  %v92_v3 = vand.u32 4294901760, %v62_v0  ;;  %v95_v4 = vand.u32 4294901760, %v63_v1  ;;  %v65_v5 = vld [vmem:[%s3508_s1 + $0x18] sm:$0xff]  ;;  %v58_v7 = vld [vmem:[%s3507_s0] sm:$0xff]  ;;  %s3042_s26 = smov 96  }
  0x29   :  { %v98_v6 = vand.u32 4294901760, %v64_v2  ;;  %v59_v8 = vld [vmem:[%s3507_s0 + $0x8] sm:$0xff]  ;;  %v101_v9 = vand.u32 4294901760, %v65_v5  ;;  %v80_v10 = vsel %vm78_vm0, %v58_v7, 0  ;;  %v60_v12 = vld [vmem:[%s3507_s0 + $0x10] sm:$0xff]  ;;  %v61_v13 = vld [vmem:[%s3507_s0 + $0x18] sm:$0xff] }
  0x2a   :  { %v83_v11 = vsel %vm78_vm0, %v59_v8, 0  ;;  %v3148_v14 = vpack.c.bf16 %v95_v4, %v92_v3  ;;  %v3150_v15 = vand.u32 4294901760, %v80_v10  ;;  %v202_v17 = vsub.f32 %v62_v0, %v92_v3  ;;  %v2273_v60 = vld [vmem:[%s3509_s2] ss:$0 sm:$0xff]  ;;  %s3043_s27 = smov 64   ;;  %s3045_s28 = smov [#allocation7]  }
  0x2b   :  { %v3152_v16 = vand.u32 4294901760, %v83_v11  ;;  %v3154_v18 = vpack.c.bf16 %v101_v9, %v98_v6  ;;  %v209_v19 = vsub.f32 %v63_v1, %v95_v4  ;;  %v86_v20 = vsel %vm78_vm0, %v60_v12, 0  ;;  %s2244_s30 = sshll.u32 %s3045_s28, 4  ;;  %s2245_s30 = int_to_ptr.vmem [resolvable:$true] %s2244_s30 }
  0x2c   :  { %v89_v21 = vsel %vm78_vm0, %v61_v13, 0  ;;  %2673 = vmatprep.subr.bf16.mxu1 %v3148_v14  ;;  %2697 = vmatprep.subr.bf16.mxu0 %v3148_v14  ;;  %v3161_v22 = vsub.f32 %v80_v10, %v3150_v15  ;;  %v203_v24 = vand.u32 4294901760, %v202_v17  ;;  %v3166_v25 = vand.u32 4294901760, %v86_v20  ;;  %p2987_p3 = scmp.lt.s32.totalorder %s2245_s30, %s2245_s30 }
  0x2d   :  { %v3164_v23 = vsub.f32 %v83_v11, %v3152_v16  ;;  %2675 = vmatpush3.bf16.msra.mxu1 %v3148_v14  ;;  %2699 = vmatpush3.bf16.msra.mxu0 %v3148_v14  ;;  %v210_v26 = vand.u32 4294901760, %v209_v19  ;;  %v3170_v27 = vand.u32 4294901760, %v89_v21  ;;  %v216_v28 = vsub.f32 %v64_v2, %v98_v6 }
  0x2e   :  { %v223_v29 = vsub.f32 %v65_v5, %v101_v9  ;;  %2677 = vmatprep.subr.bf16.mxu1 %v3154_v18  ;;  %2701 = vmatprep.subr.bf16.mxu0 %v3154_v18  ;;  %v3175_v30 = vand.u32 4294901760, %v3161_v22  ;;  %v204_v32 = vsub.f32 %v202_v17, %v203_v24  ;;  %v3181_v33 = vsub.f32 %v86_v20, %v3166_v25 }
  0x2f   :  { %v3178_v31 = vand.u32 4294901760, %v3164_v23  ;;  %v211_v34 = vsub.f32 %v209_v19, %v210_v26  ;;  %v2704_v35 = vpack.c.bf16 %v210_v26, %v203_v24  ;;  %v3184_v36 = vsub.f32 %v89_v21, %v3170_v27 }
  0x30   :  { %v217_v37 = vand.u32 4294901760, %v216_v28  ;;  %v163_v38 = vsub.f32 %v3161_v22, %v3175_v30  ;;  %2470 = vmatprep.mubr.f32.mxu0 %v3175_v30  ;;  %v205_v40 = vand.u32 4294901760, %v204_v32  ;;  %v3192_v41 = vand.u32 4294901760, %v3181_v33 }
  0x31   :  { %v173_v39 = vsub.f32 %v3164_v23, %v3178_v31  ;;  %2679 = vmatpush3.bf16.msra.mxu1 %v3154_v18  ;;  %2703 = vmatpush3.bf16.msra.mxu0 %v3154_v18  ;;  %v212_v42 = vand.u32 4294901760, %v211_v34  ;;  %v3197_v43 = vand.u32 4294901760, %v3184_v36  ;;  %v224_v45 = vand.u32 4294901760, %v223_v29 }
  0x32   :  { %v218_v44 = vsub.f32 %v216_v28, %v217_v37  ;;  %v164_v46 = vand.u32 4294901760, %v163_v38  ;;  %2705 = vmatprep.subr.bf16.mxu0 %v2704_v35  ;;  %v183_v48 = vsub.f32 %v3181_v33, %v3192_v41  ;;  %v2688_v58 = vpack.c.bf16 %v209_v19, %v202_v17 }
  0x33   :  { %v3199_v47 = vand.u32 4294901760, %v173_v39  ;;  %v2680_v49 = vpack.c.bf16 %v212_v42, %v205_v40  ;;  %v193_v50 = vsub.f32 %v3184_v36, %v3197_v43  ;;  %v225_v52 = vsub.f32 %v223_v29, %v224_v45 }
  0x34   :  { %v219_v51 = vand.u32 4294901760, %v218_v44  ;;  %2428 = vmatprep.mubr.f32.mxu1 %v164_v46  ;;  %2471 = vmatmul.mubr.f32.vlgmr.msra.gmra.mrb[0].mxu0 %v3178_v31  ;;  %v3206_v53 = vand.u32 4294901760, %v183_v48  ;;  %v2708_v54 = vpack.c.bf16 %v224_v45, %v217_v37  ;;  %v2692_v59 = vpack.c.bf16 %v223_v29, %v216_v28 }
  0x35   :  { %2429 = vmatmul.mubr.f32.vlgmr.msra.gmra.mrb[0].mxu1 %v3199_v47  ;;  %2681 = vmatprep.subr.bf16.mxu1 %v2680_v49  ;;  %v3209_v55 = vand.u32 4294901760, %v193_v50  ;;  %v226_v56 = vand.u32 4294901760, %v225_v52 }
  0x36   :  { %2683 = vmatpush3.bf16.msra.mxu1 %v2680_v49  ;;  %2707 = vmatpush3.bf16.msra.mxu0 %v2704_v35 }
  0x37   :  { %2431 = vmatprep.mubr.f32.mxu1 %v3206_v53  ;;  %2473 = vmatprep.mubr.f32.mxu0 %v3192_v41  ;;  %v2684_v57 = vpack.c.bf16 %v226_v56, %v219_v51 }
  0x38   :  { %2474 = vmatmul.mubr.f32.gmra.mrb[2].mxu0 %v3197_v43  ;;  %2709 = vmatprep.subr.bf16.mxu0 %v2708_v54 }
  0x39   :  { %2432 = vmatmul.mubr.f32.gmra.mrb[2].mxu1 %v3209_v55  ;;  %2685 = vmatprep.subr.bf16.mxu1 %v2684_v57 }
  0x3a   :  { %2687 = vmatpush3.bf16.msra.mxu1 %v2684_v57  ;;  %2711 = vmatpush3.bf16.msra.mxu0 %v2708_v54 }
  0x3b   :  { %2442 = vmatprep.mubr.f32.mxu1 %v3150_v15  ;;  %2484 = vmatprep.mubr.f32.mxu0 %v3150_v15 }
  0x3c   :  { %2689 = vmatprep.subr.bf16.mxu1 %v2688_v58  ;;  %2713 = vmatprep.subr.bf16.mxu0 %v3148_v14 }
  0x3d   :  { %2443 = vmatmul.mubr.f32.vlgmr.msra.gmra.mrb[0].mxu1 %v3152_v16  ;;  %2485 = vmatmul.mubr.f32.vlgmr.msra.gmra.mrb[0].mxu0 %v3152_v16 }
  0x3e   :  { %2691 = vmatpush3.bf16.msra.mxu1 %v2688_v58  ;;  %2715 = vmatpush3.bf16.msra.mxu0 %v3148_v14 }
  0x3f   :  { %2445 = vmatprep.mubr.f32.mxu1 %v3166_v25  ;;  %2487 = vmatprep.mubr.f32.mxu0 %v3166_v25 }
  0x40   :  { %2693 = vmatprep.subr.bf16.mxu1 %v2692_v59  ;;  %2717 = vmatprep.subr.bf16.mxu0 %v3154_v18 }
  0x41   :  { %2446 = vmatmul.mubr.f32.gmra.mrb[2].mxu1 %v3170_v27  ;;  %2488 = vmatmul.mubr.f32.gmra.mrb[2].mxu0 %v3170_v27 }
  0x42   :  { %2695 = vmatpush3.bf16.msra.mxu1 %v2692_v59  ;;  %2719 = vmatpush3.bf16.msra.mxu0 %v3154_v18 }
  0x43   :  { %2456 = vmatprep.mubr.f32.mxu1 %v3161_v22  ;;  %2498 = vmatprep.mubr.f32.mxu0 %v3150_v15 }
  0x45   :  { %2457 = vmatmul.mubr.f32.vlgmr.msra.gmra.mrb[0].mxu1 %v3164_v23  ;;  %2499 = vmatmul.mubr.f32.vlgmr.msra.gmra.mrb[0].mxu0 %v3152_v16 }
  0x46   :  { %2459 = vmatprep.mubr.f32.mxu1 %v3181_v33  ;;  %2501 = vmatprep.mubr.f32.mxu0 %v3166_v25 }
  0x49   :  { %2460 = vmatmul.mubr.f32.gmra.mrb[2].mxu1 %v3184_v36  ;;  %2502 = vmatmul.mubr.f32.gmra.mrb[2].mxu0 %v3170_v27 }
  0x4a   :  { %2512 = vmatprep.mubr.f32.mxu1 %v164_v46 }
 0x118   :  { %v2458_v61 = vpop.f32.mrb[0].mxu1  ;;  %v2500_v62 = vpop.f32.mrb[0].mxu0 }
 0x119   :  { %v2816_v63 = vadd.f32 %v2458_v61, %v2273_v60  ;;  %v385_v0 = vpop.f32.mrb[1].mxu1  ;;  %v683_v1 = vpop.f32.mrb[1].mxu0 }
 0x11a   :  { %v2818_v2 = vadd.f32 %v2273_v60, %v385_v0 }
 0x11b   :  { %v2817_v3 = vadd.f32 %v2816_v63, %v2500_v62 }
 0x11c   :  { %v2819_v4 = vadd.f32 %v2818_v2, %v683_v1  ;;  %v2461_v5 = vpop.f32.mrb[2].mxu1  ;;  %v2503_v6 = vpop.f32.mrb[2].mxu0 }
 0x11d   :  { %v2820_v7 = vadd.f32 %v2461_v5, %v2273_v60  ;;  %v399_v8 = vpop.f32.mrb[3].mxu1  ;;  %v695_v9 = vpop.f32.mrb[3].mxu0  ;;  %v709_v14 = vsel %vm705_vm1, %v2817_v3, -inf }
 0x11e   :  { %v2822_v10 = vadd.f32 %v2273_v60, %v399_v8  ;;  %v706_v11 = vsel %vm705_vm1, %v2819_v4, -inf }
 0x11f   :  { %v2821_v12 = vadd.f32 %v2820_v7, %v2503_v6  ;;  %707 = vmax.xlane.f32.xlu0 %v706_v11 }
 0x120   :  { %v2823_v13 = vadd.f32 %v2822_v10, %v695_v9 }
 0x121   :  { %v715_v18 = vsel %vm705_vm1, %v2821_v12, -inf }
 0x122   :  { %v712_v17 = vsel %vm705_vm1, %v2823_v13, -inf }
 0x123   :  { %710 = vmax.xlane.f32.xlu0 %v709_v14  ;;  %713 = vmax.xlane.f32.xlu1 %v712_v17 }
 0x127   :  { %716 = vmax.xlane.f32.xlu1 %v715_v18  ;;  %v67_v18 = vld [vmem:[#allocation2] sm:$0xff] }
 0x1ac   :  { %v708_v19 = vpop.xlane.xlu0 %707 }
 0x1ad   :  { %v718_v20 = vsub.f32 %v2819_v4, %v708_v19  ;;  %v68_v19 = vld [vmem:[#allocation2 + $0x8] sm:$0xff] }
 0x1af   :  { %v722_v21 = vmul.f32 1.442695, %v718_v20  ;;  %v821_v20 = vand.u32 4294901760, %v67_v18 }
 0x1b0   :  { %v711_v24 = vpop.xlane.xlu0 %710  ;;  %v714_v26 = vpop.xlane.xlu1 %713 }
 0x1b1   :  { %2914 = vpow2.f32 %v722_v21  ;;  %v719_v28 = vsub.f32 %v2817_v3, %v711_v24  ;;  %v720_v29 = vsub.f32 %v2823_v13, %v714_v26  ;;  %v824_v21 = vand.u32 4294901760, %v68_v19 }
 0x1b2   :  { %v931_v26 = vsub.f32 %v67_v18, %v821_v20  ;;  %v3041_v18 = vmov 3  }
 0x1b3   :  { %v724_v32 = vmul.f32 1.442695, %v719_v28  ;;  %v726_v34 = vmul.f32 1.442695, %v720_v29  ;;  %v3310_v24 = vpack.c.bf16 %v824_v21, %v821_v20  ;;  %v938_v28 = vsub.f32 %v68_v19, %v824_v21  ;;  %v69_v29 = vld [vmem:[#allocation2 + $0x10] sm:$0xff] }
 0x1b4   :  { %v717_v35 = vpop.xlane.xlu1 %716 }
 0x1b5   :  { %2916 = vpow2.f32 %v724_v32  ;;  %v721_v37 = vsub.f32 %v2821_v12, %v717_v35  ;;  %v70_v32 = vld [vmem:[#allocation2 + $0x18] sm:$0xff]  ;;  %2721 = vmatprep.subr.bf16.mxu1 %v3310_v24 }
 0x1b6   :  { %2918 = vpow2.f32 %v726_v34  ;;  %v827_v34 = vand.u32 4294901760, %v69_v29  ;;  %v830_v35 = vand.u32 4294901760, %v70_v32  ;;  %2723 = vmatpush3.bf16.msra.mxu1 %v3310_v24 }
 0x1b7   :  { %v728_v38 = vmul.f32 1.442695, %v721_v37  ;;  %v932_v37 = vand.u32 4294901760, %v931_v26 }
 0x1b9   :  { %2920 = vpow2.f32 %v728_v38  ;;  %v939_v38 = vand.u32 4294901760, %v938_v28 }
 0x1bb   :  { %v2915_v39 = vpop.eup %2914 }
 0x1bc   :  { %v730_v40 = vsel %vm705_vm1, %v2915_v39, 0.0 }
 0x1bd   :  { %731 = vadd.xlane.f32.xlu0 %v730_v40  ;;  %v933_v40 = vsub.f32 %v931_v26, %v932_v37 }
 0x1bf   :  { %v2917_v42 = vpop.eup %2916 }
 0x1c0   :  { %v2919_v44 = vpop.eup %2918  ;;  %v733_v45 = vsel %vm705_vm1, %v2917_v42, 0.0 }
 0x1c1   :  { %734 = vadd.xlane.f32.xlu1 %v733_v45  ;;  %v736_v46 = vsel %vm705_vm1, %v2919_v44, 0.0  ;;  %v952_v45 = vsub.f32 %v70_v32, %v830_v35 }
 0x1c2   :  { %737 = vadd.xlane.f32.xlu0 %v736_v46  ;;  %v934_v46 = vand.u32 4294901760, %v933_v40 }
 0x1c3   :  { %v2921_v48 = vpop.eup %2920 }
 0x1c4   :  { %v739_v49 = vsel %vm705_vm1, %v2921_v48, 0.0 }
 0x1c5   :  { %740 = vadd.xlane.f32.xlu1 %v739_v49 }
 0x24a   :  { %v732_v50 = vpop.xlane.xlu0 %731 }
 0x24b   :  { %2922 = vrcp.f32 %v732_v50  ;;  %v953_v50 = vand.u32 4294901760, %v952_v45 }
 0x24e   :  { %v735_v51 = vpop.xlane.xlu1 %734 }
 0x24f   :  { %v738_v52 = vpop.xlane.xlu0 %737  ;;  %2924 = vrcp.f32 %v735_v51 }
 0x250   :  { %2926 = vrcp.f32 %v738_v52 }
 0x252   :  { %v741_v54 = vpop.xlane.xlu1 %740 }
 0x253   :  { %2928 = vrcp.f32 %v741_v54  ;;  %v954_v54 = vsub.f32 %v952_v45, %v953_v50 }
 0x255   :  { %v2923_v56 = vpop.eup %2922 }
 0x256   :  { %v3246_v57 = vmul.f32 %v2923_v56, %v2915_v39  ;;  %v2724_v39 = vpack.c.bf16 %v830_v35, %v827_v34 }
 0x258   :  { %v750_v58 = vsel %vm705_vm1, %v3246_v57, -inf  ;;  %2725 = vmatprep.subr.bf16.mxu1 %v2724_v39 }
 0x259   :  { %v2925_v59 = vpop.eup %2924  ;;  %751 = vmax.xlane.f32.xlu0 %v750_v58  ;;  %2727 = vmatpush3.bf16.msra.mxu1 %v2724_v39  ;;  %v955_v58 = vand.u32 4294901760, %v954_v54 }
 0x25a   :  { %v2927_v60 = vpop.eup %2926  ;;  %v3250_v61 = vmul.f32 %v2925_v59, %v2917_v42  ;;  %v940_v42 = vsub.f32 %v938_v28, %v939_v38 }
 0x25b   :  { %v3252_v62 = vmul.f32 %v2927_v60, %v2919_v44  ;;  %v945_v44 = vsub.f32 %v69_v29, %v827_v34  ;;  %v2736_v60 = vpack.c.bf16 %v938_v28, %v931_v26 }
 0x25c   :  { %v753_v63 = vsel %vm705_vm1, %v3250_v61, -inf  ;;  %2513 = vmatmul.mubr.f32.vlgmr.msra.gmra.mrb[4].mxu1 %v3199_v47  ;;  %v2752_v47 = vpack.c.bf16 %v939_v38, %v932_v37 }
 0x25d   :  { %v2929_v0 = vpop.eup %2928  ;;  %v756_v1 = vsel %vm705_vm1, %v3252_v62, -inf  ;;  %754 = vmax.xlane.f32.xlu1 %v753_v63  ;;  %v946_v49 = vand.u32 4294901760, %v945_v44  ;;  %2515 = vmatprep.mubr.f32.mxu1 %v3206_v53  ;;  %v2740_v63 = vpack.c.bf16 %v952_v45, %v945_v44 }
 0x25e   :  { %v3258_v2 = vmul.f32 %v2929_v0, %v2921_v48  ;;  %757 = vmax.xlane.f32.xlu0 %v756_v1  ;;  %v941_v48 = vand.u32 4294901760, %v940_v42  ;;  %v1578_v42 = vld [vmem:[#allocation5] sm:$0xff] }
 0x25f   :  { %v947_v52 = vsub.f32 %v945_v44, %v946_v49  ;;  %v2756_v53 = vpack.c.bf16 %v953_v50, %v946_v49  ;;  %v1579_v44 = vld [vmem:[#allocation5 + $0x8] sm:$0xff]  ;;  %v1602_v45 = vand.u32 4294901760, %v1578_v42 }
 0x260   :  { %v759_v3 = vsel %vm705_vm1, %v3258_v2, -inf  ;;  %v2728_v51 = vpack.c.bf16 %v941_v48, %v934_v46  ;;  %2516 = vmatmul.mubr.f32.gmra.mrb[6].mxu1 %v3209_v55  ;;  %v1605_v46 = vand.u32 4294901760, %v1579_v44 }
 0x261   :  { %760 = vmax.xlane.f32.xlu1 %v759_v3  ;;  %v948_v56 = vand.u32 4294901760, %v947_v52  ;;  %2526 = vmatprep.mubr.f32.mxu1 %v3150_v15  ;;  %v1581_v52 = vld [vmem:[#allocation5 + $0x18] sm:$0xff] }
 0x262   :  { %2729 = vmatprep.subr.bf16.mxu1 %v2728_v51  ;;  %v3388_v49 = vpack.c.bf16 %v1605_v46, %v1602_v45 }
 0x263   :  { %2731 = vmatpush3.bf16.msra.mxu1 %v2728_v51  ;;  %v2732_v59 = vpack.c.bf16 %v955_v58, %v948_v56  ;;  %v1580_v51 = vld [vmem:[#allocation5 + $0x10] sm:$0xff]  ;;  %v1611_v56 = vand.u32 4294901760, %v1581_v52 }
 0x264   :  { %2769 = vmatprep.subr.bf16.mxu0 %v3388_v49  ;;  %v1608_v54 = vand.u32 4294901760, %v1580_v51 }
 0x265   :  { %2733 = vmatprep.subr.bf16.mxu1 %v2732_v59  ;;  %2771 = vmatpush3.bf16.msra.mxu0 %v3388_v49 }
 0x266   :  { %v3394_v58 = vpack.c.bf16 %v1611_v56, %v1608_v54 }
 0x267   :  { %2735 = vmatpush3.bf16.msra.mxu1 %v2732_v59 }
 0x268   :  { %2737 = vmatprep.subr.bf16.mxu1 %v2736_v60  ;;  %2773 = vmatprep.subr.bf16.mxu0 %v3394_v58 }
 0x269   :  { %2775 = vmatpush3.bf16.msra.mxu0 %v3394_v58 }
 0x26a   :  { %2527 = vmatmul.mubr.f32.vlgmr.msra.gmra.mrb[4].mxu1 %v3152_v16 }
 0x26b   :  { %2739 = vmatpush3.bf16.msra.mxu1 %v2736_v60  ;;  %2529 = vmatprep.mubr.f32.mxu1 %v3166_v25 }
 0x26c   :  { %2741 = vmatprep.subr.bf16.mxu1 %v2740_v63 }
 0x26e   :  { %2530 = vmatmul.mubr.f32.gmra.mrb[6].mxu1 %v3170_v27 }
 0x26f   :  { %2743 = vmatpush3.bf16.msra.mxu1 %v2740_v63  ;;  %2540 = vmatprep.mubr.f32.mxu1 %v3161_v22 }
 0x270   :  { %2745 = vmatprep.subr.bf16.mxu1 %v3310_v24 }
 0x272   :  { %2541 = vmatmul.mubr.f32.vlgmr.msra.gmra.mrb[4].mxu1 %v3164_v23 }
 0x273   :  { %2747 = vmatpush3.bf16.msra.mxu1 %v3310_v24  ;;  %2543 = vmatprep.mubr.f32.mxu1 %v3181_v33 }
 0x274   :  { %2749 = vmatprep.subr.bf16.mxu1 %v2724_v39 }
 0x276   :  { %2544 = vmatmul.mubr.f32.gmra.mrb[6].mxu1 %v3184_v36 }
 0x277   :  { %2751 = vmatpush3.bf16.msra.mxu1 %v2724_v39  ;;  %2554 = vmatprep.mubr.f32.mxu1 %v3175_v30 }
 0x278   :  { %2753 = vmatprep.subr.bf16.mxu1 %v2752_v47 }
 0x27a   :  { %2555 = vmatmul.mubr.f32.vlgmr.msra.gmra.mrb[4].mxu1 %v3178_v31 }
 0x27b   :  { %2755 = vmatpush3.bf16.msra.mxu1 %v2752_v47  ;;  %2557 = vmatprep.mubr.f32.mxu1 %v3192_v41 }
 0x27c   :  { %2757 = vmatprep.subr.bf16.mxu1 %v2756_v53 }
 0x27e   :  { %2558 = vmatmul.mubr.f32.gmra.mrb[6].mxu1 %v3197_v43 }
 0x27f   :  { %2759 = vmatpush3.bf16.msra.mxu1 %v2756_v53  ;;  %2568 = vmatprep.mubr.f32.mxu1 %v3150_v15 }
 0x280   :  { %2761 = vmatprep.subr.bf16.mxu1 %v3310_v24 }
 0x282   :  { %2569 = vmatmul.mubr.f32.vlgmr.msra.gmra.mrb[4].mxu1 %v3152_v16 }
 0x283   :  { %2763 = vmatpush3.bf16.msra.mxu1 %v3310_v24  ;;  %2571 = vmatprep.mubr.f32.mxu1 %v3166_v25  ;;  %v2274_v24 = vld [vmem:[%s3511_s4] ss:$0 sm:$0xff]  ;;  %s3044_s4 = smov 32  }
 0x284   :  { %2765 = vmatprep.subr.bf16.mxu1 %v2724_v39 }
 0x286   :  { %2572 = vmatmul.mubr.f32.gmra.mrb[6].mxu1 %v3170_v27 }
 0x287   :  { %2767 = vmatpush3.bf16.msra.mxu1 %v2724_v39  ;;  %2582 = vmatprep.mubr.f32.mxu1 %v3150_v15 }
 0x28a   :  { %2583 = vmatmul.mubr.f32.vlgmr.msra.gmra.mrb[4].mxu1 %v3152_v16 }
 0x28b   :  { %2585 = vmatprep.mubr.f32.mxu1 %v3166_v25 }
 0x28e   :  { %2586 = vmatmul.mubr.f32.gmra.mrb[6].mxu1 %v3170_v27 }
 0x2e6   :  { %v3262_v4 = vpop.xlane.xlu0 %751 }
 0x2e7   :  { %vm762_vm2 = vcmp.eq.f32.partialorder %v3246_v57, %v3262_v4 }
 0x2e8   :  { %v3270_v5 = vsel %vm762_vm2, -inf, %v3246_v57  ;;  %v766_v23 = vsel %vm762_vm2, %v3246_v57, 0.0 }
 0x2e9   :  { %v774_v6 = vsel %vm705_vm1, %v3270_v5, -inf }
 0x2ea   :  { %775 = vmax.xlane.f32.xlu0 %v774_v6  ;;  %v3274_v7 = vpop.xlane.xlu1 %754 }
 0x2eb   :  { %v3276_v8 = vpop.xlane.xlu0 %757  ;;  %vm763_vm3 = vcmp.eq.f32.partialorder %v3250_v61, %v3274_v7 }
 0x2ec   :  { %vm764_vm4 = vcmp.eq.f32.partialorder %v3252_v62, %v3276_v8  ;;  %v3286_v9 = vsel %vm763_vm3, -inf, %v3250_v61  ;;  %v767_v16 = vsel %vm763_vm3, %v3250_v61, 0.0 }
 0x2ed   :  { %v3292_v10 = vsel %vm764_vm4, -inf, %v3252_v62  ;;  %v777_v11 = vsel %vm705_vm1, %v3286_v9, -inf  ;;  %v768_v27 = vsel %vm764_vm4, %v3252_v62, 0.0 }
 0x2ee   :  { %v780_v12 = vsel %vm705_vm1, %v3292_v10, -inf  ;;  %778 = vmax.xlane.f32.xlu1 %v777_v11  ;;  %v3298_v13 = vpop.xlane.xlu1 %760 }
 0x2ef   :  { %781 = vmax.xlane.f32.xlu0 %v780_v12  ;;  %vm765_vm5 = vcmp.eq.f32.partialorder %v3258_v2, %v3298_v13  ;;  %v3039_v12 = vmov 2  }
 0x2f0   :  { %v3306_v14 = vsel %vm765_vm5, -inf, %v3258_v2 }
 0x2f1   :  { %v783_v17 = vsel %vm705_vm1, %v3306_v14, -inf }
 0x2f2   :  { %784 = vmax.xlane.f32.xlu1 %v783_v17  ;;  %v3040_v17 = vmov 0  }
 0x35d   :  { %v2584_v1 = vpop.f32.mrb[4].mxu1 }
 0x35e   :  { %v1412_v3 = vpop.f32.mrb[5].mxu1  ;;  %v3379_v32 = vadd.f32 %v2584_v1, %v2274_v24 }
 0x35f   :  { %v3376_v26 = vadd.f32 %v2274_v24, %v1412_v3 }
 0x377   :  { %v776_v22 = vpop.xlane.xlu0 %775 }
 0x378   :  { %vm786_vm6 = vcmp.eq.f32.partialorder %v3270_v5, %v776_v22  ;;  %v3369_v5 = vpop.f32.mrb[6].mxu1 }
 0x379   :  { %v790_v30 = vsel %vm786_vm6, %v3246_v57, %v766_v23  ;;  %v769_v57 = vsel %vm765_vm5, %v3258_v2, 0.0  ;;  %v3371_v6 = vpop.f32.mrb[7].mxu1  ;;  %v3400_v47 = vadd.f32 %v3369_v5, %v2274_v24 }
 0x37a   :  { %v794_v31 = vsel %vm705_vm1, %v790_v30, 0.0 }
 0x37b   :  { %795 = vadd.xlane.f32.xlu0 %v794_v31  ;;  %v779_v15 = vpop.xlane.xlu1 %778 }
 0x37c   :  { %v782_v25 = vpop.xlane.xlu0 %781  ;;  %vm787_vm7 = vcmp.eq.f32.partialorder %v3286_v9, %v779_v15 }
 0x37d   :  { %vm788_vm8 = vcmp.eq.f32.partialorder %v3292_v10, %v782_v25  ;;  %v791_v33 = vsel %vm787_vm7, %v3250_v61, %v767_v16  ;;  %v1712_v16 = vsub.f32 %v1578_v42, %v1602_v45  ;;  %v1719_v25 = vsub.f32 %v1579_v44, %v1605_v46 }
 0x37e   :  { %v792_v36 = vsel %vm788_vm8, %v3252_v62, %v768_v27  ;;  %v797_v41 = vsel %vm705_vm1, %v791_v33, 0.0  ;;  %v3038_v62 = vmov 1  }
 0x37f   :  { %v800_v43 = vsel %vm705_vm1, %v792_v36, 0.0  ;;  %798 = vadd.xlane.f32.xlu1 %v797_v41  ;;  %v785_v55 = vpop.xlane.xlu1 %784  ;;  %2904 = vset.pattern.permute.xlu0 %v3038_v62  ;;  %v1720_v41 = vand.u32 4294901760, %v1719_v25 }
 0x380   :  { %801 = vadd.xlane.f32.xlu0 %v800_v43  ;;  %vm789_vm9 = vcmp.eq.f32.partialorder %v3306_v14, %v785_v55  ;;  %2901 = vset.pattern.permute.xlu1 %v3038_v62 }
 0x381   :  { %v793_v0 = vsel %vm789_vm9, %v3258_v2, %v769_v57  ;;  %v1721_v55 = vsub.f32 %v1719_v25, %v1720_v41  ;;  %v1726_v57 = vsub.f32 %v1580_v51, %v1608_v54 }
 0x382   :  { %v803_v61 = vsel %vm705_vm1, %v793_v0, 0.0 }
 0x383   :  { %804 = vadd.xlane.f32.xlu1 %v803_v61  ;;  %v1722_v1 = vand.u32 4294901760, %v1721_v55  ;;  %v1727_v3 = vand.u32 4294901760, %v1726_v57 }
 0x408   :  { %v796_v4 = vpop.xlane.xlu0 %795 }
 0x409   :  { %2930 = vrcp.f32 %v796_v4 }
 0x40c   :  { %v799_v7 = vpop.xlane.xlu1 %798 }
 0x40d   :  { %2932 = vrcp.f32 %v799_v7  ;;  %v802_v19 = vpop.xlane.xlu0 %801  ;;  %v1728_v7 = vsub.f32 %v1726_v57, %v1727_v3 }
 0x410   :  { %v805_v8 = vpop.xlane.xlu1 %804 }
 0x411   :  { %2934 = vrcp.f32 %v805_v8 }
 0x412   :  { %2936 = vrcp.f32 %v802_v19 }
 0x413   :  { %v2931_v9 = vpop.eup %2930 }
 0x414   :  { %v807_v2 = vmul.f32 %v2931_v9, %v790_v30  ;;  %v3407_v30 = vadd.f32 %v2274_v24, %v3371_v6 }
 0x416   :  { %1459 = vperm.xlu0 %2904, %v807_v2  }
 0x417   :  { %v2933_v10 = vpop.eup %2932 }
 0x418   :  { %v809_v11 = vmul.f32 %v2933_v10, %v791_v33 }
 0x41a   :  { %1463 = vperm.xlu1 %2901, %v809_v11   ;;  %2908 = vset.pattern.permute.xlu0 %v3039_v12 }
 0x41b   :  { %v2935_v13 = vpop.eup %2934 }
 0x41c   :  { %v813_v14 = vmul.f32 %v2935_v13, %v793_v0  ;;  %v2937_v20 = vpop.eup %2936  ;;  %v1733_v0 = vsub.f32 %v1581_v52, %v1611_v56  ;;  %v3418_v13 = vpack.c.bf16 %v1719_v25, %v1712_v16 }
 0x41d   :  { %v811_v21 = vmul.f32 %v2937_v20, %v792_v36  ;;  %v1713_v36 = vand.u32 4294901760, %v1712_v16 }
 0x41e   :  { %2902 = vset.pattern.permute.xlu1 %v3039_v12  ;;  %1511 = vperm.xlu0 %2908, %v813_v14   ;;  %v1734_v4 = vand.u32 4294901760, %v1733_v0 }
 0x41f   :  { %1503 = vperm.xlu1 %2902, %v809_v11   ;;  %v1714_v43 = vsub.f32 %v1712_v16, %v1713_v36 }
 0x420   :  { %v1735_v8 = vsub.f32 %v1733_v0, %v1734_v4 }
 0x422   :  { %2911 = vset.pattern.permute.xlu0 %v3040_v17  ;;  %v1736_v10 = vand.u32 4294901760, %v1735_v8 }
 0x423   :  { %2903 = vset.pattern.permute.xlu1 %v3041_v18  ;;  %1436 = vperm.xlu0 %2911, %v807_v2  }
 0x424   :  { %1543 = vperm.xlu1 %2903, %v809_v11  }
 0x427   :  { %1451 = vperm.xlu0 %2911, %v813_v14  }
 0x428   :  { %2905 = vset.pattern.permute.xlu1 %v3039_v12 }
 0x429   :  { %1499 = vperm.xlu1 %2905, %v807_v2  }
 0x42b   :  { %2913 = vset.pattern.permute.xlu0 %v3041_v18 }
 0x42d   :  { %2906 = vset.pattern.permute.xlu1 %v3041_v18 }
 0x42e   :  { %1539 = vperm.xlu1 %2906, %v807_v2   ;;  %v1729_v2 = vand.u32 4294901760, %v1728_v7 }
 0x432   :  { %2907 = vset.pattern.permute.xlu1 %v3038_v62  ;;  %v1715_v62 = vand.u32 4294901760, %v1714_v43 }
 0x433   :  { %1471 = vperm.xlu1 %2907, %v813_v14  }
 0x434   :  { %v2776_v6 = vpack.c.bf16 %v1722_v1, %v1715_v62 }
 0x436   :  { %2777 = vmatprep.subr.bf16.mxu0 %v2776_v6 }
 0x437   :  { %1467 = vperm.xlu1 %2907, %v811_v21  }
 0x43b   :  { %2909 = vset.pattern.permute.xlu1 %v3039_v12  ;;  %v2780_v12 = vpack.c.bf16 %v1736_v10, %v1729_v2 }
 0x43c   :  { %1507 = vperm.xlu1 %2909, %v811_v21  }
 0x440   :  { %2910 = vset.pattern.permute.xlu1 %v3041_v18  ;;  %v3424_v18 = vpack.c.bf16 %v1734_v4, %v1727_v3 }
 0x441   :  { %1547 = vperm.xlu1 %2910, %v811_v21  }
 0x445   :  { %1551 = vperm.xlu1 %2910, %v813_v14   ;;  %v3420_v14 = vpack.c.bf16 %v1733_v0, %v1726_v57 }
 0x449   :  { %2912 = vset.pattern.permute.xlu1 %v3040_v17  ;;  %v3422_v17 = vpack.c.bf16 %v1720_v41, %v1713_v36 }
 0x44a   :  { %1441 = vperm.xlu1 %2912, %v809_v11  }
 0x44e   :  { %1446 = vperm.xlu1 %2912, %v811_v21  }
 0x495   :  { %v1460_v28 = vpop.permute.xlu0 %1459 }
 0x496   :  { %v1474_v29 = vmul.f32 %v3376_v26, %v1460_v28 }
 0x498   :  { %1482 = vrot.lane.b32.xlu1 %v1474_v29, %s3042_s26 }
 0x499   :  { %v1464_v34 = vpop.permute.xlu1 %1463 }
 0x49a   :  { %v1475_v35 = vmul.f32 %v3379_v32, %v1464_v34 }
 0x49c   :  { %1484 = vrot.lane.b32.xlu0 %v1475_v35, %s3042_s26 }
 0x49d   :  { %v1512_v63 = vpop.permute.xlu0 %1511 }
 0x49e   :  { %v1504_v37 = vpop.permute.xlu1 %1503  ;;  %v1517_v53 = vmul.f32 %v3400_v47, %v1512_v63 }
 0x49f   :  { %v1515_v38 = vmul.f32 %v3379_v32, %v1504_v37 }
 0x4a1   :  { %1524 = vrot.lane.b32.xlu0 %v1515_v38, %s3043_s27 }
 0x4a2   :  { %v1437_v19 = vpop.permute.xlu0 %1436 }
 0x4a3   :  { %v1544_v39 = vpop.permute.xlu1 %1543  ;;  %v1454_v44 = vmul.f32 %v3376_v26, %v1437_v19 }
 0x4a4   :  { %v1555_v40 = vmul.f32 %v3379_v32, %v1544_v39 }
 0x4a6   :  { %1564 = vrot.lane.b32.xlu0 %v1555_v40, %s3044_s4  ;;  %v1452_v20 = vpop.permute.xlu0 %1451 }
 0x4a8   :  { %v1500_v48 = vpop.permute.xlu1 %1499 }
 0x4a9   :  { %v1514_v50 = vmul.f32 %v3376_v26, %v1500_v48 }
 0x4ab   :  { %1522 = vrot.lane.b32.xlu1 %v1514_v50, %s3043_s27 }
 0x4ad   :  { %v1540_v59 = vpop.permute.xlu1 %1539 }
 0x4ae   :  { %v1554_v60 = vmul.f32 %v3376_v26, %v1540_v59 }
 0x4b0   :  { %1562 = vrot.lane.b32.xlu0 %v1554_v60, %s3044_s4 }
 0x4b2   :  { %v1472_v22 = vpop.permute.xlu1 %1471 }
 0x4b3   :  { %v1477_v23 = vmul.f32 %v3400_v47, %v1472_v22 }
 0x4b4   :  { %1528 = vrot.lane.b32.xlu0 %v1517_v53, %s3043_s27 }
 0x4b5   :  { %1488 = vrot.lane.b32.xlu1 %v1477_v23, %s3042_s26 }
 0x4b6   :  { %v1468_v31 = vpop.permute.xlu1 %1467 }
 0x4b7   :  { %v1476_v15 = vmul.f32 %v3407_v30, %v1468_v31 }
 0x4b9   :  { %1486 = vrot.lane.b32.xlu1 %v1476_v15, %s3042_s26 }
 0x4bb   :  { %v1508_v27 = vpop.permute.xlu1 %1507 }
 0x4bc   :  { %v1516_v33 = vmul.f32 %v3407_v30, %v1508_v27  ;;  %v1457_v27 = vmul.f32 %v3400_v47, %v1452_v20 }
 0x4be   :  { %1526 = vrot.lane.b32.xlu1 %v1516_v33, %s3043_s27 }
 0x4c0   :  { %v1548_v61 = vpop.permute.xlu1 %1547 }
 0x4c1   :  { %v1556_v5 = vmul.f32 %v3407_v30, %v1548_v61 }
 0x4c3   :  { %1566 = vrot.lane.b32.xlu1 %v1556_v5, %s3044_s4 }
 0x4c4   :  { %v1552_v9 = vpop.permute.xlu1 %1551 }
 0x4c5   :  { %v1557_v11 = vmul.f32 %v3400_v47, %v1552_v9 }
 0x4c7   :  { %1568 = vrot.lane.b32.xlu0 %v1557_v11, %s3044_s4  ;;  %v2275_v11 = vld [vmem:[%s3513_s6] ss:$0 sm:$0xff]  ;;  %s2982_s6 = scalar_lea.vmem %s2245_s30, 512 }
 0x4c8   :  { %p2983_p2 = scmp.ne.s32.totalorder %s2245_s30, %s2982_s6  ;;  %p2988_p4 = scmp.lt.s32.totalorder %s2982_s6, %s2982_s6 }
 0x4c9   :  { %v1442_v24 = vpop.permute.xlu1 %1441 }
 0x4ca   :  { %v1455_v28 = vmul.f32 %v3379_v32, %v1442_v24  ;;  %p2989_p5 = por %p2988_p4, %p2987_p3 }
 0x4cc   :  { %p2990_p6 = pnand %p2989_p5, %p2983_p2 }
 0x4cd   :  { %v1447_v35 = vpop.permute.xlu1 %1446 }
 0x4ce   :  { %v1456_v16 = vmul.f32 %v3407_v30, %v1447_v35 }
 0x50a   :  { %v1483_v40 = vpop.permute.xlu1 %1482 }
 0x50b   :  { %v1494_v46 = vadd.f32 %v1483_v40, %v1454_v44 }
 0x50e   :  { %v1485_v21 = vpop.permute.xlu0 %1484 }
 0x50f   :  { %v1495_v34 = vadd.f32 %v1485_v21, %v1455_v28 }
 0x513   :  { %v1525_v29 = vpop.permute.xlu0 %1524 }
 0x514   :  { %v1535_v37 = vadd.f32 %v1525_v29, %v1495_v34 }
 0x518   :  { %v1565_v38 = vpop.permute.xlu0 %1564 }
 0x519   :  { %v1575_v39 = vadd.f32 %v1565_v38, %v1535_v37 }
 0x51b   :  { %v1593_v42 = vsel %vm78_vm0, %v1575_v39, 0 }
 0x51c   :  { %v3429_v48 = vand.u32 4294901760, %v1593_v42 }
 0x51d   :  { %v1523_v45 = vpop.permute.xlu1 %1522 }
 0x51e   :  { %v1534_v50 = vadd.f32 %v1523_v45, %v1494_v46  ;;  %v1681_v52 = vsub.f32 %v1593_v42, %v3429_v48 }
 0x520   :  { %v1682_v59 = vand.u32 4294901760, %v1681_v52 }
 0x522   :  { %v1563_v51 = vpop.permute.xlu0 %1562  ;;  %v1683_v22 = vsub.f32 %v1681_v52, %v1682_v59 }
 0x523   :  { %v1574_v32 = vadd.f32 %v1563_v51, %v1534_v50 }
 0x524   :  { %v1684_v15 = vand.u32 4294901760, %v1683_v22 }
 0x525   :  { %v1590_v54 = vsel %vm78_vm0, %v1574_v32, 0 }
 0x526   :  { %v3433_v56 = vand.u32 4294901760, %v1590_v54  ;;  %v1529_v43 = vpop.permute.xlu0 %1528 }
 0x527   :  { %v1489_v60 = vpop.permute.xlu1 %1488 }
 0x528   :  { %v1671_v63 = vsub.f32 %v1590_v54, %v3433_v56  ;;  %v1497_v36 = vadd.f32 %v1489_v60, %v1457_v27 }
 0x52a   :  { %v1672_v53 = vand.u32 4294901760, %v1671_v63  ;;  %v1537_v61 = vadd.f32 %v1529_v43, %v1497_v36 }
 0x52b   :  { %v1487_v26 = vpop.permute.xlu1 %1486 }
 0x52c   :  { %v1673_v23 = vsub.f32 %v1671_v63, %v1672_v53  ;;  %v1496_v33 = vadd.f32 %v1487_v26, %v1456_v16 }
 0x52e   :  { %v1674_v31 = vand.u32 4294901760, %v1673_v23 }
 0x530   :  { %2596 = vmatprep.mubr.f32.mxu0 %v1674_v31  ;;  %v1527_v25 = vpop.permute.xlu1 %1526 }
 0x531   :  { %2597 = vmatmul.mubr.f32.vlgmr.msra.gmra.mrb[4].mxu0 %v1684_v15  ;;  %v1536_v41 = vadd.f32 %v1527_v25, %v1496_v33 }
 0x532   :  { %2779 = vmatpush3.bf16.msra.mxu0 %v2776_v6 }
 0x533   :  { %2781 = vmatprep.subr.bf16.mxu0 %v2780_v12 }
 0x535   :  { %v1567_v55 = vpop.permute.xlu1 %1566 }
 0x536   :  { %v1576_v57 = vadd.f32 %v1567_v55, %v1536_v41  ;;  %2783 = vmatpush3.bf16.msra.mxu0 %v2780_v12 }
 0x537   :  { %2785 = vmatprep.subr.bf16.mxu0 %v3418_v13 }
 0x538   :  { %v1596_v0 = vsel %vm78_vm0, %v1576_v57, 0 }
 0x539   :  { %v1690_v30 = vand.u32 4294901760, %v1596_v0  ;;  %v1569_v62 = vpop.permute.xlu0 %1568 }
 0x53a   :  { %v1577_v1 = vadd.f32 %v1569_v62, %v1537_v61 }
 0x53b   :  { %v1691_v3 = vsub.f32 %v1596_v0, %v1690_v30 }
 0x53c   :  { %v1599_v47 = vsel %vm78_vm0, %v1577_v1, 0 }
 0x53d   :  { %v1700_v4 = vand.u32 4294901760, %v1599_v47  ;;  %v1692_v5 = vand.u32 4294901760, %v1691_v3 }
 0x53f   :  { %v1701_v6 = vsub.f32 %v1599_v47, %v1700_v4  ;;  %v1693_v7 = vsub.f32 %v1691_v3, %v1692_v5 }
 0x541   :  { %v1694_v8 = vand.u32 4294901760, %v1693_v7  ;;  %v1702_v9 = vand.u32 4294901760, %v1701_v6 }
 0x543   :  { %2599 = vmatprep.mubr.f32.mxu0 %v1694_v8  ;;  %v1703_v2 = vsub.f32 %v1701_v6, %v1702_v9 }
 0x545   :  { %v1704_v10 = vand.u32 4294901760, %v1703_v2 }
 0x547   :  { %2600 = vmatmul.mubr.f32.gmra.mrb[6].mxu0 %v1704_v10 }
 0x548   :  { %2610 = vmatprep.mubr.f32.mxu0 %v3433_v56 }
 0x54b   :  { %2611 = vmatmul.mubr.f32.vlgmr.msra.gmra.mrb[4].mxu0 %v3429_v48 }
 0x54c   :  { %2613 = vmatprep.mubr.f32.mxu0 %v1690_v30  ;;  %2787 = vmatpush3.bf16.msra.mxu0 %v3418_v13 }
 0x54d   :  { %2789 = vmatprep.subr.bf16.mxu0 %v3420_v14 }
 0x54f   :  { %2614 = vmatmul.mubr.f32.gmra.mrb[6].mxu0 %v1700_v4 }
 0x550   :  { %2791 = vmatpush3.bf16.msra.mxu0 %v3420_v14  ;;  %2624 = vmatprep.mubr.f32.mxu0 %v1671_v63 }
 0x551   :  { %2793 = vmatprep.subr.bf16.mxu0 %v3388_v49 }
 0x553   :  { %2625 = vmatmul.mubr.f32.vlgmr.msra.gmra.mrb[4].mxu0 %v1681_v52 }
 0x554   :  { %2627 = vmatprep.mubr.f32.mxu0 %v1691_v3  ;;  %2795 = vmatpush3.bf16.msra.mxu0 %v3388_v49 }
 0x555   :  { %2797 = vmatprep.subr.bf16.mxu0 %v3394_v58 }
 0x557   :  { %2628 = vmatmul.mubr.f32.gmra.mrb[6].mxu0 %v1701_v6 }
 0x558   :  { %2799 = vmatpush3.bf16.msra.mxu0 %v3394_v58  ;;  %2638 = vmatprep.mubr.f32.mxu0 %v1672_v53 }
 0x559   :  { %2801 = vmatprep.subr.bf16.mxu0 %v3422_v17 }
 0x55b   :  { %2639 = vmatmul.mubr.f32.vlgmr.msra.gmra.mrb[4].mxu0 %v1682_v59 }
 0x55c   :  { %2641 = vmatprep.mubr.f32.mxu0 %v1692_v5  ;;  %2803 = vmatpush3.bf16.msra.mxu0 %v3422_v17 }
 0x55d   :  { %2805 = vmatprep.subr.bf16.mxu0 %v3424_v18 }
 0x55f   :  { %2642 = vmatmul.mubr.f32.gmra.mrb[6].mxu0 %v1702_v9 }
 0x560   :  { %2807 = vmatpush3.bf16.msra.mxu0 %v3424_v18  ;;  %2652 = vmatprep.mubr.f32.mxu0 %v3433_v56 }
 0x561   :  { %2809 = vmatprep.subr.bf16.mxu0 %v3388_v49 }
 0x563   :  { %2653 = vmatmul.mubr.f32.vlgmr.msra.gmra.mrb[4].mxu0 %v3429_v48 }
 0x564   :  { %2655 = vmatprep.mubr.f32.mxu0 %v1690_v30  ;;  %2811 = vmatpush3.bf16.msra.mxu0 %v3388_v49 }
 0x565   :  { %2813 = vmatprep.subr.bf16.mxu0 %v3394_v58 }
 0x567   :  { %2656 = vmatmul.mubr.f32.gmra.mrb[6].mxu0 %v1700_v4 }
 0x568   :  { %2815 = vmatpush3.bf16.msra.mxu0 %v3394_v58  ;;  %2666 = vmatprep.mubr.f32.mxu0 %v3433_v56 }
 0x56b   :  { %2667 = vmatmul.mubr.f32.vlgmr.msra.gmra.mrb[4].mxu0 %v3429_v48 }
 0x56c   :  { %2669 = vmatprep.mubr.f32.mxu0 %v1690_v30 }
 0x56f   :  { %2670 = vmatmul.mubr.f32.gmra.mrb[6].mxu0 %v1700_v4 }
 0x63e   :  { %v2668_v12 = vpop.f32.mrb[4].mxu0 }
 0x63f   :  { %v2828_v13 = vadd.f32 %v2668_v12, %v2275_v11  ;;  %v2193_v14 = vpop.f32.mrb[5].mxu0 }
 0x640   :  { %v2829_v17 = vadd.f32 %v2275_v11, %v2193_v14 }
 0x641   :  { %2216 = vst.msk [vmem:[#allocation7 + $0x8] sm:$0xff] %vm78_vm0, %v2828_v13  ;;  %2225 = vrot.lane.b32.xlu0 %v2828_v13, %s3042_s26 }
 0x642   :  { %2215 = vst.msk [vmem:[#allocation7] sm:$0xff] %vm78_vm0, %v2829_v17  ;;  %v2671_v49 = vpop.f32.mrb[6].mxu0  ;;  %2223 = vrot.lane.b32.xlu1 %v2829_v17, %s3042_s26 }
 0x643   :  { %v2830_v58 = vadd.f32 %v2671_v49, %v2275_v11  ;;  %v2205_v18 = vpop.f32.mrb[7].mxu0 }
 0x644   :  { %v2831_v19 = vadd.f32 %v2275_v11, %v2205_v18 }
 0x645   :  { %2218 = vst.msk [vmem:[#allocation7 + $0x18] sm:$0xff] %vm78_vm0, %v2830_v58  ;;  %2229 = vrot.lane.b32.xlu0 %v2830_v58, %s3042_s26 }
 0x646   :  { %2217 = vst.msk [vmem:[#allocation7 + $0x10] sm:$0xff] %vm78_vm0, %v2831_v19  ;;  %2227 = vrot.lane.b32.xlu1 %v2831_v19, %s3042_s26 }
 0x647   :  { %2993 = shalt.err (!%p2990_p6)
}
 0x648   :  { %s2994_s11 = scalar_lea.hbm %s3514_s7, 512 }
 0x649   :  { %p2995_p7 = scmp.ne.s32.totalorder %s3514_s7, %s2994_s11  ;;  %p2998_p8 = scmp.lt.u32.totalorder %s2994_s11, %s3514_s7 }
 0x64b   :  { %p3000_p9 = pnand %p2998_p8, %p2995_p7 }
 0x64d   :  { %3003 = shalt.err (!%p3000_p9)
}
 0x64e   :  { %2250 = dma.vmem_to_hbm [thread:$0]  %s2245_s30, 512, %s3514_s7, [#allocation4], %s3035_s15, %s3035_s15, %s3036_s16  }
 0x64f   :  { %s3046_s19 = smov [#allocation8]  }
 0x650   :  { %s2256_s20 = sshll.u32 %s3046_s19, 4  ;;  %s2257_s20 = int_to_ptr.vmem [resolvable:$true] %s2256_s20 }
 0x651   :  { %s3004_s21 = scalar_lea.vmem %s2257_s20, 512  ;;  %p3009_p11 = scmp.lt.s32.totalorder %s2257_s20, %s2257_s20 }
 0x652   :  { %p3005_p10 = scmp.ne.s32.totalorder %s2257_s20, %s3004_s21  ;;  %p3010_p12 = scmp.lt.s32.totalorder %s3004_s21, %s3004_s21 }
 0x654   :  { %p3011_p13 = por %p3010_p12, %p3009_p11 }
 0x656   :  { %p3012_p0 = pnand %p3011_p13, %p3005_p10 }
 0x6b3   :  { %v2226_v20 = vpop.permute.xlu0 %2225 }
 0x6b4   :  { %2236 = vst.msk [vmem:[#allocation8 + $0x8] sm:$0xff] %vm78_vm0, %v2226_v20  ;;  %v2224_v21 = vpop.permute.xlu1 %2223 }
 0x6b5   :  { %2235 = vst.msk [vmem:[#allocation8] sm:$0xff] %vm78_vm0, %v2224_v21 }
 0x6b7   :  { %v2230_v24 = vpop.permute.xlu0 %2229 }
 0x6b8   :  { %2238 = vst.msk [vmem:[#allocation8 + $0x18] sm:$0xff] %vm78_vm0, %v2230_v24  ;;  %v2228_v28 = vpop.permute.xlu1 %2227 }
 0x6b9   :  { %2237 = vst.msk [vmem:[#allocation8 + $0x10] sm:$0xff] %vm78_vm0, %v2228_v28 }
 0x6ba   :  { %3015 = shalt.err (!%p3012_p0)
}
 0x6bb   :  { %s3016_s23 = scalar_lea.hbm %s3515_s8, 512 }
 0x6bc   :  { %p3017_p1 = scmp.ne.s32.totalorder %s3515_s8, %s3016_s23  ;;  %p3020_p2 = scmp.lt.u32.totalorder %s3016_s23, %s3515_s8 }
 0x6be   :  { %p3022_p3 = pnand %p3020_p2, %p3017_p1 }
 0x6c0   :  { %3025 = shalt.err (!%p3022_p3)
}
 0x6c1   :  { %2262 = dma.vmem_to_hbm [thread:$0]  %s2257_s20, 512, %s3515_s8, [#allocation9], %s3035_s15, %s3035_s15, %s3036_s16  }
 0x6c2   :  { %3030 = dma.done.wait [#allocation4], 512  }
 0x6c3   :  { %3031 = vsyncadd [#allocation4], 4294966784 }
 0x6c4   :  { %3032 = dma.done.wait [#allocation9], 512  }
 0x6c5   :  { %3033 = vsyncadd [#allocation9], 4294966784 }
 0x6c6   :  { %2269 = vsyncpa [#allocation3], 1 }
 0x6c7   :  { %2270 = vsyncpa [#allocation6], 1 }
 0x6c8   :  { %2271 = vsyncpa [#allocation4], 1 }
 0x6c9   :  { %2272 = vsyncpa [#allocation9], 1 }

</bundles_post_ra>
